<compile_context>
chip_gen: v7x
topology: tpu7x:2x2x1
jax: 0.10.0
libtpu: 0.0.40
codegen_flags: <defaults>
</compile_context>

<pallas_src>
import jax
import jax.numpy as jnp
from jax.experimental import pallas as pl
from jax.experimental.pallas import tpu as pltpu


def _round_up(x, m):
    return ((x + m - 1) // m) * m


# ---------------------------------------------------------------------------
# Kernels
# ---------------------------------------------------------------------------
def _clip_feat_kernel(img_ref, txt_ref, feat_ref):
    # img_ref, txt_ref: [TB, D] f32 or bf16; feat_ref: [TB, D] f32
    f = img_ref[...].astype(jnp.float32) + txt_ref[...].astype(jnp.float32)
    inv = jax.lax.rsqrt(jnp.sum(f * f, axis=1, keepdims=True))   # XLU + EUP
    feat_ref[...] = f * inv                                      # VALU mul


def _clip_head_kernel(img_ref, txt_ref, w_ref, b_ref, feat_ref, logits_ref):
    # img_ref, txt_ref: [TB, D] f32/bf16   w_ref: [D, Cpad] bf16
    # b_ref: [1, Cpad] f32                 outputs: feat [TB, D] f32,
    #                                               logits [TB, Cpad] f32
    f = img_ref[...].astype(jnp.float32) + txt_ref[...].astype(jnp.float32)
    inv = jax.lax.rsqrt(jnp.sum(f * f, axis=1, keepdims=True))   # XLU + EUP
    feat_ref[...] = f * inv
    # MXU matmul on the un-normalized f (bf16 operands, f32 accumulation);
    # the per-row 1/||f|| scale is applied to the small [TB, Cpad] result so
    # the MXU does not sit behind the reduce->rsqrt chain.
    acc = jnp.dot(f.astype(w_ref.dtype), w_ref[...],
                  preferred_element_type=jnp.float32)
    logits_ref[...] = acc * inv + b_ref[...]


# ---------------------------------------------------------------------------
# One-time head-parameter preparation (hoisted out of the forward path)
# ---------------------------------------------------------------------------
def prepare_head_params(w_head, b_head):
    """Pad the classification head to a lane-dense 128-multiple class dim and
    cast the weight to bf16.  Call ONCE at init; pass the results to every
    clip_classifier_forward call.

    w_head: [D, C] f32 (transposed torch nn.Linear weight), b_head: [C] f32.
    Returns (w_pad [D, c_pad] bf16, b_pad [1, c_pad] f32).
    """
    D, C = w_head.shape
    c_pad = max(128, _round_up(C, 128))
    w_pad = jnp.zeros((D, c_pad), jnp.bfloat16)
    w_pad = w_pad.at[:, :C].set(w_head.astype(jnp.bfloat16))
    b_pad = jnp.zeros((1, c_pad), jnp.float32)
    b_pad = b_pad.at[:, :C].set(b_head.astype(jnp.float32).reshape(1, C))
    return w_pad, b_pad


def _batch_tile(B, block_b):
    # Full batch in one tile only when B <= 8; otherwise pick a multiple of 8
    # giving >= 2 grid steps so the "parallel" axis can shard across the two
    # TensorCores on v7x.  Capped at block_b (512) for VMEM budgets.
    if B <= 8:
        return B
    return min(block_b, _round_up(pl.cdiv(B, 2), 8))


# ---------------------------------------------------------------------------
# Wrapper
# ---------------------------------------------------------------------------
def clip_classifier_forward(images_features, texts_features, w_pad=None,
                            b_pad=None, return_classification=False,
                            block_b=512):
    """Pallas implementation of CLIPClassifier.forward (post-encoder part).

    images_features, texts_features: [B, D] float32 or bfloat16.
    w_pad, b_pad: outputs of prepare_head_params (only needed when
    return_classification=True).

    Returns:
      features [B, D] f32                                  if not return_classification
      (features [B, D] f32, logits_padded [B, c_pad] f32)  otherwise; only the
      first n_classes columns of logits_padded are valid (slice at the caller
      so the slice fuses into the consumer instead of costing an HBM round trip).
    """
    B, D = images_features.shape
    tb = _batch_tile(B, block_b)
    grid = (pl.cdiv(B, tb),)
    in_bytes = B * D * (images_features.dtype.itemsize
                        + texts_features.dtype.itemsize)
    feat_out_bytes = B * D * 4

    if not return_classification:
        # Feat-only path: skip the W load and the logits writeback entirely.
        feat = pl.pallas_call(
            _clip_feat_kernel,
            out_shape=jax.ShapeDtypeStruct((B, D), jnp.float32),
            grid=grid,
            in_specs=[
                pl.BlockSpec((tb, D), lambda i: (i, 0)),
                pl.BlockSpec((tb, D), lambda i: (i, 0)),
            ],
            out_specs=pl.BlockSpec((tb, D), lambda i: (i, 0)),
            compiler_params=pltpu.CompilerParams(
                dimension_semantics=("parallel",)),
            cost_estimate=pl.CostEstimate(
                flops=4 * B * D,
                transcendentals=B,
                bytes_accessed=in_bytes + feat_out_bytes),
        )(images_features, texts_features)
        return feat

    c_pad = w_pad.shape[1]
    feat, logits_pad = pl.pallas_call(
        _clip_head_kernel,
        out_shape=(
            jax.ShapeDtypeStruct((B, D), jnp.float32),
            jax.ShapeDtypeStruct((B, c_pad), jnp.float32),
        ),
        grid=grid,
        in_specs=[
            pl.BlockSpec((tb, D), lambda i: (i, 0)),
            pl.BlockSpec((tb, D), lambda i: (i, 0)),
            pl.BlockSpec((D, c_pad), lambda i: (0, 0)),   # resident across steps
            pl.BlockSpec((1, c_pad), lambda i: (0, 0)),   # resident across steps
        ],
        out_specs=(
            pl.BlockSpec((tb, D), lambda i: (i, 0)),
            pl.BlockSpec((tb, c_pad), lambda i: (i, 0)),
        ),
        compiler_params=pltpu.CompilerParams(
            dimension_semantics=("parallel",)),
        cost_estimate=pl.CostEstimate(
            flops=2 * B * D * c_pad + 5 * B * D,
            transcendentals=B,
            bytes_accessed=(in_bytes + feat_out_bytes
                            + D * c_pad * 2 + B * c_pad * 4 + c_pad * 4)),
    )(images_features, texts_features, w_pad, b_pad)

    return feat, logits_pad


# ---------------------------------------------------------------------------
# Test
# ---------------------------------------------------------------------------
if __name__ == "__main__":
    # Small shapes: batch=8, embed_dim=512 (ViT-B/32 text_projection dim),
    # n_classes=16.
    B, D, C = 8, 512, 16
    key = jax.random.PRNGKey(0)
    k1, k2, k3, k4 = jax.random.split(key, 4)

    # Stand-ins for clip.encode_image / clip.encode_text outputs.
    images_features = jax.random.normal(k1, (B, D), dtype=jnp.float32)
    texts_features = jax.random.normal(k2, (B, D), dtype=jnp.float32)

    # Deterministic classification_head = nn.Linear(embed_dim, n_classes)
    # parameters (uniform(-1/sqrt(D), 1/sqrt(D)) like torch's default init).
    bound = 1.0 / float(jnp.sqrt(jnp.float32(D)))
    w_head = jax.random.uniform(k3, (D, C), jnp.float32, -bound, bound)
    b_head = jax.random.uniform(k4, (C,), jnp.float32, -bound, bound)

    # One-time init: pad + bf16-cast the head parameters (hoisted from forward).
    w_pad, b_pad = prepare_head_params(w_head, b_head)

    # return_classification=True path.
    feat, logits_pad = clip_classifier_forward(
        images_features, texts_features, w_pad, b_pad,
        return_classification=True)
    # return_classification=False path (feat-only kernel).
    feat_only = clip_classifier_forward(images_features, texts_features,
                                        return_classification=False)
    jax.block_until_ready((feat, logits_pad, feat_only))
    logits = logits_pad[:, :C]   # caller-side slice of the padded logits

    # Pure-JAX references.
    f_ref = images_features + texts_features
    feat_ref = f_ref / jnp.linalg.norm(f_ref, ord=2, axis=1, keepdims=True)
    logits_ref = jnp.dot(feat_ref, w_head,
                         precision=jax.lax.Precision.HIGHEST) + b_head

    assert jnp.allclose(feat, feat_ref, atol=1e-5, rtol=1e-5)
    assert jnp.allclose(feat_only, feat_ref, atol=1e-5, rtol=1e-5)
    # Logits tolerance accounts for the intentional bf16 MXU operands
    # (accumulation is f32).
    assert jnp.allclose(logits, logits_ref, atol=2e-3, rtol=1e-2)

    # Second check: B=32 exercises the multi-step "parallel" grid (tb=16,
    # grid=(2,)) and the bf16 feature-input path (halved HBM read traffic).
    B2 = 32
    kk1, kk2 = jax.random.split(jax.random.PRNGKey(1), 2)
    img2 = jax.random.normal(kk1, (B2, D), jnp.float32).astype(jnp.bfloat16)
    txt2 = jax.random.normal(kk2, (B2, D), jnp.float32).astype(jnp.bfloat16)
    feat2, logits2_pad = clip_classifier_forward(
        img2, txt2, w_pad, b_pad, return_classification=True)
    jax.block_until_ready((feat2, logits2_pad))

    f2 = img2.astype(jnp.float32) + txt2.astype(jnp.float32)
    feat2_ref = f2 / jnp.linalg.norm(f2, ord=2, axis=1, keepdims=True)
    logits2_ref = jnp.dot(feat2_ref, w_head,
                          precision=jax.lax.Precision.HIGHEST) + b_head
    assert jnp.allclose(feat2, feat2_ref, atol=1e-5, rtol=1e-5)
    assert jnp.allclose(logits2_pad[:, :C], logits2_ref, atol=2e-3, rtol=1e-2)

    print("KERNEL_OK")
</pallas_src>

<mosaic_0001>
module attributes {stable_mosaic.version = 11 : i64} {
  func.func @_clip_head_kernel(%arg0: i32, %arg1: memref<8x512xf32, #tpu.memory_space<vmem>>, %arg2: memref<8x512xf32, #tpu.memory_space<vmem>>, %arg3: memref<512x128xbf16, #tpu.memory_space<vmem>>, %arg4: memref<1x128xf32, #tpu.memory_space<vmem>>, %arg5: memref<8x512xf32, #tpu.memory_space<vmem>>, %arg6: memref<8x128xf32, #tpu.memory_space<vmem>>) attributes {dimension_semantics = [#tpu.dimension_semantics<parallel>], iteration_bounds = array<i64: 1>, scalar_prefetch = 0 : i64, scratch_operands = 0 : i64, tpu.core_type = #tpu.core_type<tc>, window_params = [{transform_indices = @transform_0, window_bounds = array<i64: 8, 512>}, {transform_indices = @transform_1, window_bounds = array<i64: 8, 512>}, {pipeline_mode = #tpu.pipeline_mode<synchronous>, transform_indices = @transform_2, window_bounds = array<i64: 512, 128>}, {pipeline_mode = #tpu.pipeline_mode<synchronous>, transform_indices = @transform_3, window_bounds = array<i64: 1, 128>}, {transform_indices = @transform_4, window_bounds = array<i64: 8, 512>}, {transform_indices = @transform_5, window_bounds = array<i64: 8, 128>}]} {
    %c0 = arith.constant 0 : index
    %c0_0 = arith.constant 0 : index
    %0 = vector.load %arg1[%c0, %c0_0] : memref<8x512xf32, #tpu.memory_space<vmem>>, vector<8x512xf32>
    %c0_1 = arith.constant 0 : index
    %c0_2 = arith.constant 0 : index
    %1 = vector.load %arg2[%c0_1, %c0_2] : memref<8x512xf32, #tpu.memory_space<vmem>>, vector<8x512xf32>
    %2 = arith.addf %0, %1 : vector<8x512xf32>
    %3 = arith.mulf %2, %2 : vector<8x512xf32>
    %cst = arith.constant dense<0.000000e+00> : vector<8xf32>
    %4 = vector.multi_reduction <add>, %3, %cst [1] : vector<8x512xf32> to vector<8xf32>
    %5 = vector.shape_cast %4 : vector<8xf32> to vector<8x1xf32>
    %6 = math.rsqrt %5 : vector<8x1xf32>
    %7 = vector.broadcast %6 : vector<8x1xf32> to vector<8x512xf32>
    %8 = arith.mulf %2, %7 : vector<8x512xf32>
    %c0_3 = arith.constant 0 : index
    %c0_4 = arith.constant 0 : index
    %9 = vector.load %arg5[%c0_3, %c0_4] : memref<8x512xf32, #tpu.memory_space<vmem>>, vector<8x512xf32>
    tpu.vector_store %arg5[%c0_3, %c0_4], %8 {strides = array<i32>} : memref<8x512xf32, #tpu.memory_space<vmem>>, vector<8x512xf32>,
    %10 = arith.truncf %2 : vector<8x512xf32> to vector<8x512xbf16>
    %c0_5 = arith.constant 0 : index
    %c0_6 = arith.constant 0 : index
    %11 = vector.load %arg3[%c0_5, %c0_6] : memref<512x128xbf16, #tpu.memory_space<vmem>>, vector<512x128xbf16>
    %cst_7 = arith.constant dense<0.000000e+00> : vector<8x128xf32>
    %12 = tpu.matmul %10, %11, %cst_7 {dimension_numbers = #tpu.dot_dimension_numbers<[1], [0], [0], [1], [0, 0, 1, 1], [], []>} : vector<8x512xbf16>, vector<512x128xbf16>, vector<8x128xf32> -> vector<8x128xf32>
    %13 = vector.broadcast %6 : vector<8x1xf32> to vector<8x128xf32>
    %14 = arith.mulf %12, %13 : vector<8x128xf32>
    %c0_8 = arith.constant 0 : index
    %c0_9 = arith.constant 0 : index
    %15 = vector.load %arg4[%c0_8, %c0_9] : memref<1x128xf32, #tpu.memory_space<vmem>>, vector<1x128xf32>
    %16 = vector.broadcast %15 : vector<1x128xf32> to vector<8x128xf32>
    %17 = arith.addf %14, %16 : vector<8x128xf32>
    %c0_10 = arith.constant 0 : index
    %c0_11 = arith.constant 0 : index
    %18 = vector.load %arg6[%c0_10, %c0_11] : memref<8x128xf32, #tpu.memory_space<vmem>>, vector<8x128xf32>
    tpu.vector_store %arg6[%c0_10, %c0_11], %17 {strides = array<i32>} : memref<8x128xf32, #tpu.memory_space<vmem>>, vector<8x128xf32>,
    return
  }
  func.func @transform_0(%arg0: i32) -> (i32, i32) {
    %c0_i32 = arith.constant 0 : i32
    %c0_i32_0 = arith.constant 0 : i32
    return %arg0, %c0_i32 : i32, i32
  }
  func.func @transform_1(%arg0: i32) -> (i32, i32) {
    %c0_i32 = arith.constant 0 : i32
    %c0_i32_0 = arith.constant 0 : i32
    return %arg0, %c0_i32 : i32, i32
  }
  func.func @transform_2(%arg0: i32) -> (i32, i32) {
    %c0_i32 = arith.constant 0 : i32
    %c0_i32_0 = arith.constant 0 : i32
    %c0_i32_1 = arith.constant 0 : i32
    return %c0_i32, %c0_i32_0 : i32, i32
  }
  func.func @transform_3(%arg0: i32) -> (i32, i32) {
    %c0_i32 = arith.constant 0 : i32
    %c0_i32_0 = arith.constant 0 : i32
    %c0_i32_1 = arith.constant 0 : i32
    return %c0_i32, %c0_i32_0 : i32, i32
  }
  func.func @transform_4(%arg0: i32) -> (i32, i32) {
    %c0_i32 = arith.constant 0 : i32
    %c0_i32_0 = arith.constant 0 : i32
    return %arg0, %c0_i32 : i32, i32
  }
  func.func @transform_5(%arg0: i32) -> (i32, i32) {
    %c0_i32 = arith.constant 0 : i32
    %c0_i32_0 = arith.constant 0 : i32
    return %arg0, %c0_i32 : i32, i32
  }
}

</mosaic_0001>

<bundles_post_ra>
// kernel: tpu_custom_call.1
= control target key start
LH: loop header
LB: loop body
LE: loop exit
PB: predicated region body
PF: predicated region fallthrough
CT: control target
= control target key end

     0   :  { %11 = vsyncpa [#allocation3], 0  ;;  %s805_s0 = inlined_call_operand.hbm [shape: f32[8,512], index: 0, kind: input, shape index: {}]   ;;  %s806_s1 = inlined_call_operand.hbm [shape: f32[8,512], index: 1, kind: input, shape index: {}]   ;;  %s807_s2 = inlined_call_operand.hbm [shape: bf16[512,128], index: 2, kind: input, shape index: {}]   ;;  %s808_s3 = inlined_call_operand.vmem [shape: f32[1,128], index: 3, kind: input, shape index: {}]   ;;  %s809_s4 = inlined_call_operand.hbm [shape: f32[8,512], index: 4, kind: output, shape index: {0}]   ;;  %s810_s5 = inlined_call_operand.hbm [shape: f32[8,128], index: 5, kind: output, shape index: {1}]  }
   0x1   :  { %12 = vsyncpa [#allocation6], 0 }
   0x2   :  { %13 = vsyncpa [#allocation4], 0 }
   0x3   :  { %14 = vsyncpa [#allocation10], 0  ;;  %s705_s18 = smov [#allocation5]   ;;  %s706_s20 = smov [#allocation2]  }
   0x4   :  { %s31_s19 = sshll.u32 %s705_s18, 4  ;;  %s21_s21 = sshll.u32 %s706_s20, 4  ;;  %s32_s19 = int_to_ptr.vmem [resolvable:$true] %s31_s19  ;;  %s22_s21 = int_to_ptr.vmem [resolvable:$true] %s21_s21 }
   0x5   :  { %s587_s24 = scalar_lea.hbm %s806_s1, 512 }
   0x6   :  { %p588_p0 = scmp.ne.s32.totalorder %s806_s1, %s587_s24  ;;  %p591_p1 = scmp.lt.u32.totalorder %s587_s24, %s806_s1 }
   0x8   :  { %p593_p2 = pnand %p591_p1, %p588_p0 }
   0xa   :  { %596 = shalt.err (!%p593_p2)
}
   0xb   :  { %s597_s29 = scalar_lea.vmem %s32_s19, 512  ;;  %p602_p4 = scmp.lt.s32.totalorder %s32_s19, %s32_s19 }
   0xc   :  { %p598_p3 = scmp.ne.s32.totalorder %s32_s19, %s597_s29  ;;  %p603_p5 = scmp.lt.s32.totalorder %s597_s29, %s597_s29 }
   0xe   :  { %p604_p6 = por %p603_p5, %p602_p4 }
  0x10   :  { %p605_p7 = pnand %p604_p6, %p598_p3 }
  0x12   :  { %608 = shalt.err (!%p605_p7)
}
  0x13   :  { %34 = dma.hbm_to_vmem [thread:$0]  %s806_s1, 512, %s32_s19, [#allocation6]  }
  0x14   :  { %s609_s9 = scalar_lea.hbm %s805_s0, 512 }
  0x15   :  { %p610_p8 = scmp.ne.s32.totalorder %s805_s0, %s609_s9  ;;  %p613_p9 = scmp.lt.u32.totalorder %s609_s9, %s805_s0 }
  0x17   :  { %p615_p10 = pnand %p613_p9, %p610_p8 }
  0x19   :  { %618 = shalt.err (!%p615_p10)
}
  0x1a   :  { %s619_s14 = scalar_lea.vmem %s22_s21, 512  ;;  %p624_p12 = scmp.lt.s32.totalorder %s22_s21, %s22_s21 }
  0x1b   :  { %p620_p11 = scmp.ne.s32.totalorder %s22_s21, %s619_s14  ;;  %p625_p13 = scmp.lt.s32.totalorder %s619_s14, %s619_s14 }
  0x1d   :  { %p626_p0 = por %p625_p13, %p624_p12 }
  0x1f   :  { %p627_p1 = pnand %p626_p0, %p620_p11 }
  0x21   :  { %630 = shalt.err (!%p627_p1)
}
  0x22   :  { %24 = dma.hbm_to_vmem [thread:$0]  %s805_s0, 512, %s22_s21, [#allocation3]  }
  0x23   :  { %s707_s16 = smov [#allocation7]   ;;  %s631_s20 = scalar_lea.hbm %s807_s2, 4096 }
  0x24   :  { %s40_s17 = sshll.u32 %s707_s16, 4  ;;  %p632_p2 = scmp.ne.s32.totalorder %s807_s2, %s631_s20  ;;  %s41_s17 = int_to_ptr.vmem [resolvable:$true] %s40_s17 }
  0x25   :  { %p635_p3 = scmp.lt.u32.totalorder %s631_s20, %s807_s2 }
  0x27   :  { %p637_p4 = pnand %p635_p3, %p632_p2 }
  0x29   :  { %640 = shalt.err (!%p637_p4)
}
  0x2a   :  { %s641_s26 = scalar_lea.vmem %s41_s17, 4096  ;;  %p646_p6 = scmp.lt.s32.totalorder %s41_s17, %s41_s17 }
  0x2b   :  { %p642_p5 = scmp.ne.s32.totalorder %s41_s17, %s641_s26  ;;  %p647_p7 = scmp.lt.s32.totalorder %s641_s26, %s641_s26 }
  0x2d   :  { %p648_p8 = por %p647_p7, %p646_p6 }
  0x2f   :  { %p649_p9 = pnand %p648_p8, %p642_p5 }
  0x31   :  { %652 = shalt.err (!%p649_p9)
}
  0x32   :  { %s708_s0 = smov 64   ;;  %s709_s21 = smov 4  }
  0x33   :  { %46 = dma.hbm_to_vmem [thread:$0]  %s807_s2, 4096, %s41_s17, [#allocation6], %s708_s0, %s708_s0, %s709_s21  }
  0x34   :  { %697 = dma.done.wait [#allocation3], 512  }
  0x35   :  { %698 = vsyncadd [#allocation3], 4294966784 }
  0x36   :  { %699 = dma.done.wait [#allocation6], 4608  }
  0x37   :  { %700 = vsyncadd [#allocation6], 4294962688  ;;  %v553_v0 = vld [vmem:[#allocation7 + $0x40] sm:$0xff]   ;;  %v557_v4 = vld [vmem:[#allocation7 + $0x48] sm:$0xff]   ;;  %s710_s2 = smov [#allocation8]  }
  0x38   :  { %v554_v1 = vld [vmem:[#allocation7 + $0xc0] sm:$0xff]   ;;  %502 = vmatprep.subr.bf16.mxu0 %v553_v0  ;;  %v558_v5 = vld [vmem:[#allocation7 + $0xc8] sm:$0xff]   ;;  %v561_v8 = vld [vmem:[#allocation7 + $0x50] sm:$0xff]   ;;  %s445_s29 = sshll.u32 %s710_s2, 4  ;;  %s446_s29 = int_to_ptr.vmem [resolvable:$true] %s445_s29 }
  0x39   :  { %v555_v2 = vld [vmem:[#allocation7] sm:$0xff]   ;;  %524 = vmatprep.subr.bf16.mxu1 %v554_v1  ;;  %v559_v6 = vld [vmem:[#allocation7 + $0x8] sm:$0xff]   ;;  %v562_v9 = vld [vmem:[#allocation7 + $0xd0] sm:$0xff]   ;;  %s653_s30 = scalar_lea.vmem %s446_s29, 512  ;;  %p658_p11 = scmp.lt.s32.totalorder %s446_s29, %s446_s29 }
  0x3a   :  { %v556_v3 = vld [vmem:[#allocation7 + $0x80] sm:$0xff]   ;;  %503 = vmatpush3.bf16.msra.mxu0 %v555_v2  ;;  %v560_v7 = vld [vmem:[#allocation7 + $0x88] sm:$0xff]   ;;  %v563_v10 = vld [vmem:[#allocation7 + $0x10] sm:$0xff]   ;;  %p654_p10 = scmp.ne.s32.totalorder %s446_s29, %s653_s30  ;;  %p659_p12 = scmp.lt.s32.totalorder %s653_s30, %s653_s30 }
  0x3b   :  { %525 = vmatpush3.bf16.msra.mxu1 %v556_v3  ;;  %504 = vmatprep.subr.bf16.mxu0 %v557_v4  ;;  %v564_v11 = vld [vmem:[#allocation7 + $0x90] sm:$0xff]   ;;  %v565_v12 = vld [vmem:[#allocation7 + $0x58] sm:$0xff]   ;;  %v569_v16 = vld [vmem:[#allocation7 + $0x60] sm:$0xff]  }
  0x3c   :  { %526 = vmatprep.subr.bf16.mxu1 %v558_v5  ;;  %v566_v13 = vld [vmem:[#allocation7 + $0xd8] sm:$0xff]   ;;  %v570_v17 = vld [vmem:[#allocation7 + $0xe0] sm:$0xff]   ;;  %v573_v20 = vld [vmem:[#allocation7 + $0x68] sm:$0xff]   ;;  %p660_p13 = por %p659_p12, %p658_p11 }
  0x3d   :  { %v567_v14 = vld [vmem:[#allocation7 + $0x18] sm:$0xff]   ;;  %v571_v18 = vld [vmem:[#allocation7 + $0x20] sm:$0xff]   ;;  %v574_v21 = vld [vmem:[#allocation7 + $0xe8] sm:$0xff]  }
  0x3e   :  { %505 = vmatpush3.bf16.msra.mxu0 %v559_v6  ;;  %v568_v15 = vld [vmem:[#allocation7 + $0x98] sm:$0xff]   ;;  %v572_v19 = vld [vmem:[#allocation7 + $0xa0] sm:$0xff]   ;;  %v575_v22 = vld [vmem:[#allocation7 + $0x28] sm:$0xff]   ;;  %p661_p0 = pnand %p660_p13, %p654_p10 }
  0x3f   :  { %527 = vmatpush3.bf16.msra.mxu1 %v560_v7  ;;  %506 = vmatprep.subr.bf16.mxu0 %v561_v8  ;;  %v576_v23 = vld [vmem:[#allocation7 + $0xa8] sm:$0xff]   ;;  %v577_v24 = vld [vmem:[#allocation7 + $0x70] sm:$0xff]   ;;  %v581_v28 = vld [vmem:[#allocation7 + $0x78] sm:$0xff]  }
  0x40   :  { %528 = vmatprep.subr.bf16.mxu1 %v562_v9  ;;  %v578_v25 = vld [vmem:[#allocation7 + $0xf0] sm:$0xff]   ;;  %v582_v29 = vld [vmem:[#allocation7 + $0xf8] sm:$0xff]   ;;  %v60_v32 = vld [vmem:[#allocation2 + $0x8] sm:$0xff] }
  0x41   :  { %v579_v26 = vld [vmem:[#allocation7 + $0x30] sm:$0xff]   ;;  %v583_v30 = vld [vmem:[#allocation7 + $0x38] sm:$0xff]   ;;  %v64_v33 = vld [vmem:[#allocation5 + $0x8] sm:$0xff] }
  0x42   :  { %507 = vmatpush3.bf16.msra.mxu0 %v563_v10  ;;  %v580_v27 = vld [vmem:[#allocation7 + $0xb0] sm:$0xff]   ;;  %v584_v31 = vld [vmem:[#allocation7 + $0xb8] sm:$0xff]   ;;  %v68_v35 = vadd.f32 %v64_v33, %v60_v32  ;;  %v59_v37 = vld [vmem:[#allocation2] sm:$0xff] }
  0x43   :  { %529 = vmatpush3.bf16.msra.mxu1 %v564_v11  ;;  %508 = vmatprep.subr.bf16.mxu0 %v565_v12  ;;  %v62_v34 = vld [vmem:[#allocation2 + $0x18] sm:$0xff]  ;;  %v63_v38 = vld [vmem:[#allocation5] sm:$0xff]  ;;  %v61_v41 = vld [vmem:[#allocation2 + $0x10] sm:$0xff] }
  0x44   :  { %530 = vmatprep.subr.bf16.mxu1 %v566_v13  ;;  %v66_v36 = vld [vmem:[#allocation5 + $0x18] sm:$0xff]  ;;  %v67_v40 = vadd.f32 %v63_v38, %v59_v37  ;;  %v65_v42 = vld [vmem:[#allocation5 + $0x10] sm:$0xff]  ;;  %v90_v43 = vpack.c.bf16 %v68_v35, %v68_v35  ;;  %v72_v45 = vmul.f32 %v68_v35, %v68_v35 }
  0x45   :  { %v70_v39 = vadd.f32 %v66_v36, %v62_v34  ;;  %v69_v44 = vadd.f32 %v65_v42, %v61_v41 }
  0x46   :  { %509 = vmatpush3.bf16.msra.mxu0 %v567_v14  ;;  %v89_v47 = vpack.c.bf16 %v67_v40, %v67_v40  ;;  %v71_v48 = vmul.f32 %v67_v40, %v67_v40  ;;  %381 = vmatprep.mubr.bf16.mxu0 %v90_v43 }
  0x47   :  { %531 = vmatpush3.bf16.msra.mxu1 %v568_v15  ;;  %510 = vmatprep.subr.bf16.mxu0 %v569_v16  ;;  %v92_v46 = vpack.c.bf16 %v70_v39, %v70_v39  ;;  %v91_v49 = vpack.c.bf16 %v69_v44, %v69_v44  ;;  %v73_v50 = vmul.f32 %v69_v44, %v69_v44 }
  0x48   :  { %532 = vmatprep.subr.bf16.mxu1 %v570_v17  ;;  %v74_v51 = vmul.f32 %v70_v39, %v70_v39  ;;  %v75_v52 = vadd.f32 %v72_v45, %v71_v48 }
  0x49   :  { %421 = vmatprep.mubr.bf16.mxu1 %v92_v46 }
  0x4a   :  { %511 = vmatpush3.bf16.msra.mxu0 %v571_v18  ;;  %v76_v53 = vadd.f32 %v75_v52, %v73_v50 }
  0x4b   :  { %533 = vmatpush3.bf16.msra.mxu1 %v572_v19  ;;  %512 = vmatprep.subr.bf16.mxu0 %v573_v20 }
  0x4c   :  { %534 = vmatprep.subr.bf16.mxu1 %v574_v21  ;;  %v77_v54 = vadd.f32 %v76_v53, %v74_v51 }
  0x4e   :  { %513 = vmatpush3.bf16.msra.mxu0 %v575_v22  ;;  %78 = vadd.xlane.f32.xlu0 %v77_v54 }
  0x4f   :  { %535 = vmatpush3.bf16.msra.mxu1 %v576_v23  ;;  %514 = vmatprep.subr.bf16.mxu0 %v577_v24 }
  0x50   :  { %536 = vmatprep.subr.bf16.mxu1 %v578_v25 }
  0x52   :  { %515 = vmatpush3.bf16.msra.mxu0 %v579_v26 }
  0x53   :  { %537 = vmatpush3.bf16.msra.mxu1 %v580_v27  ;;  %516 = vmatprep.subr.bf16.mxu0 %v581_v28 }
  0x54   :  { %538 = vmatprep.subr.bf16.mxu1 %v582_v29 }
  0x56   :  { %517 = vmatpush3.bf16.msra.mxu0 %v583_v30 }
  0x57   :  { %539 = vmatpush3.bf16.msra.mxu1 %v584_v31 }
  0x59   :  { %382 = vmatmul.mubr.bf16.vlgmr.msra.gmra.mrb[0].mxu0 %v89_v47 }
  0x5a   :  { %422 = vmatmul.mubr.bf16.vlgmr.msra.gmra.mrb[0].mxu1 %v91_v49 }
  0xdb   :  { %v79_v55 = vpop.xlane.xlu0 %78 }
  0xdc   :  { %585 = vrsqrt.f32 %v79_v55 }
  0xe6   :  { %v586_v56 = vpop.eup %585 }
  0xe7   :  { %v81_v57 = vmul.f32 %v586_v56, %v67_v40  ;;  %v82_v58 = vmul.f32 %v586_v56, %v68_v35  ;;  %v83_v59 = vmul.f32 %v586_v56, %v69_v44  ;;  %v84_v60 = vmul.f32 %v586_v56, %v70_v39 }
  0xe9   :  { %85 = vst [vmem:[#allocation8] sm:$0xff] %v81_v57  ;;  %86 = vst [vmem:[#allocation8 + $0x8] sm:$0xff] %v82_v58 }
  0xea   :  { %87 = vst [vmem:[#allocation8 + $0x10] sm:$0xff] %v83_v59  ;;  %88 = vst [vmem:[#allocation8 + $0x18] sm:$0xff] %v84_v60 }
  0xeb   :  { %664 = shalt.err (!%p661_p0)
}
  0xec   :  { %s665_s8 = scalar_lea.hbm %s809_s4, 512 }
  0xed   :  { %p666_p1 = scmp.ne.s32.totalorder %s809_s4, %s665_s8  ;;  %p669_p2 = scmp.lt.u32.totalorder %s665_s8, %s809_s4 }
  0xef   :  { %p671_p3 = pnand %p669_p2, %p666_p1 }
  0xf1   :  { %674 = shalt.err (!%p671_p3)
}
  0xf2   :  { %448 = dma.vmem_to_hbm [thread:$0]  %s446_s29, 512, %s809_s4, [#allocation4]   ;;  %v501_v8 = vld [vmem:[%s808_s3] ss:$0 sm:$0xff] }
  0xf3   :  { %s711_s16 = smov [#allocation9]  }
  0xf4   :  { %s455_s17 = sshll.u32 %s711_s16, 4  ;;  %s456_s17 = int_to_ptr.vmem [resolvable:$true] %s455_s17 }
  0xf5   :  { %s675_s4 = scalar_lea.vmem %s456_s17, 128  ;;  %p680_p5 = scmp.lt.s32.totalorder %s456_s17, %s456_s17 }
  0xf6   :  { %p676_p4 = scmp.ne.s32.totalorder %s456_s17, %s675_s4  ;;  %p681_p6 = scmp.lt.s32.totalorder %s675_s4, %s675_s4 }
  0xf8   :  { %p682_p7 = por %p681_p6, %p680_p5 }
  0xfa   :  { %p683_p8 = pnand %p682_p7, %p676_p4 }
 0x12c   :  { %v518_v61 = vpop.f32.mrb[0].mxu0 }
 0x12d   :  { %v540_v62 = vpop.f32.mrb[0].mxu1  ;;  %v519_v63 = vpop.f32.mrb[1].mxu0 }
 0x12e   :  { %v520_v0 = vadd.f32 %v519_v63, %v518_v61  ;;  %v541_v1 = vpop.f32.mrb[1].mxu1  ;;  %v521_v2 = vpop.f32.mrb[2].mxu0 }
 0x12f   :  { %v542_v3 = vadd.f32 %v541_v1, %v540_v62  ;;  %v543_v4 = vpop.f32.mrb[2].mxu1  ;;  %v522_v5 = vpop.f32.mrb[3].mxu0 }
 0x130   :  { %v544_v6 = vpop.f32.mrb[3].mxu1 }
 0x131   :  { %v424_v7 = vadd.f32 %v542_v3, %v520_v0 }
 0x133   :  { %v429_v9 = vmul.f32 %v586_v56, %v424_v7 }
 0x135   :  { %v437_v10 = vadd.f32 %v501_v8, %v429_v9 }
 0x137   :  { %438 = vst [vmem:[#allocation9] sm:$0xff] %v437_v10 }
 0x138   :  { %686 = shalt.err (!%p683_p8)
}
 0x139   :  { %s687_s20 = scalar_lea.hbm %s810_s5, 128 }
 0x13a   :  { %p688_p9 = scmp.ne.s32.totalorder %s810_s5, %s687_s20  ;;  %p691_p10 = scmp.lt.u32.totalorder %s687_s20, %s810_s5 }
 0x13c   :  { %p693_p11 = pnand %p691_p10, %p688_p9 }
 0x13e   :  { %696 = shalt.err (!%p693_p11)
}
 0x13f   :  { %458 = dma.vmem_to_hbm [thread:$0]  %s456_s17, 128, %s810_s5, [#allocation10]  }
 0x140   :  { %701 = dma.done.wait [#allocation4], 512  }
 0x141   :  { %702 = vsyncadd [#allocation4], 4294966784 }
 0x142   :  { %703 = dma.done.wait [#allocation10], 128  }
 0x143   :  { %704 = vsyncadd [#allocation10], 4294967168 }
 0x144   :  { %465 = vsyncpa [#allocation3], 1 }
 0x145   :  { %466 = vsyncpa [#allocation6], 1 }
 0x146   :  { %467 = vsyncpa [#allocation4], 1 }
 0x147   :  { %468 = vsyncpa [#allocation10], 1 }

</bundles_post_ra>
